<compile_context>
chip_gen: v7x
topology: tpu7x:2x2x1
jax: 0.10.0
libtpu: 0.0.40
codegen_flags: <defaults>
</compile_context>

<pallas_src>
import jax
import jax.numpy as jnp
from jax.experimental import pallas as pl
from jax.experimental.pallas import tpu as pltpu

IN_FEATURES = 10
OUT_FEATURES = 10

SMALL_B = 512   # <= this: single no-grid VMEM-resident call (no pads/slices)
TM_MAX = 2048   # upper bound on rows per grid step for the streaming path


def linear_tanh_kernel(x_ref, w_ref, b_ref, o_ref):
    # x_ref: (tm, 10), w_ref: (10, 10) stored (in, out), b_ref: (1, 10),
    # o_ref: (tm, 10).  Mosaic pads MXU / vreg layouts internally.
    y = jnp.dot(x_ref[...], w_ref[...], preferred_element_type=jnp.float32)
    o_ref[...] = jnp.tanh(y + b_ref[...]).astype(o_ref.dtype)


def _round_up(n, m):
    return ((n + m - 1) // m) * m


def linear_tanh(x, w, b):
    """x: (B, 10) f32; w: (10, 10) f32 stored (in, out) == PyTorch weight.T;
    b: (10,) f32.  Returns tanh(x @ w + b) with shape (B, 10)."""
    B = x.shape[0]
    b2d = b.reshape(1, OUT_FEATURES)

    if B <= SMALL_B:
        # Small batch: one kernel invocation, raw shapes, everything in VMEM.
        vmem = pl.BlockSpec(memory_space=pltpu.MemorySpace.VMEM)
        return pl.pallas_call(
            linear_tanh_kernel,
            out_shape=jax.ShapeDtypeStruct((B, OUT_FEATURES), jnp.float32),
            in_specs=[vmem, vmem, vmem],
            out_specs=vmem,
        )(x, w, b2d)

    # Large batch: stream x / out over a 1-D batch grid; W and b stay
    # VMEM-resident across the whole grid.  Output stays 10 lanes wide, so
    # HBM writeback carries only useful bytes.  TM is big (amortize the
    # ~0.35 us/step pipeline overhead) but capped so the grid has >= 2
    # "parallel" steps for v7x's two TensorCores.
    tm = max(8, min(TM_MAX, _round_up(pl.cdiv(B, 2), 8)))
    B_pad = _round_up(B, tm)
    x_pad = x if B_pad == B else jnp.pad(x, ((0, B_pad - B), (0, 0)))

    out_pad = pl.pallas_call(
        linear_tanh_kernel,
        out_shape=jax.ShapeDtypeStruct((B_pad, OUT_FEATURES), jnp.float32),
        grid=(B_pad // tm,),
        in_specs=[
            pl.BlockSpec((tm, IN_FEATURES), lambda i: (i, 0)),
            pl.BlockSpec((IN_FEATURES, OUT_FEATURES), lambda i: (0, 0)),
            pl.BlockSpec((1, OUT_FEATURES), lambda i: (0, 0)),
        ],
        out_specs=pl.BlockSpec((tm, OUT_FEATURES), lambda i: (i, 0)),
        compiler_params=pltpu.CompilerParams(
            dimension_semantics=("parallel",)),
        cost_estimate=pl.CostEstimate(
            flops=2 * B_pad * IN_FEATURES * OUT_FEATURES,
            transcendentals=B_pad * OUT_FEATURES,
            bytes_accessed=4 * (B_pad * (IN_FEATURES + OUT_FEATURES)
                                + IN_FEATURES * OUT_FEATURES + OUT_FEATURES),
        ),
    )(x_pad, w, b2d)
    return out_pad if B_pad == B else out_pad[:B]


if __name__ == "__main__":
    key = jax.random.PRNGKey(0)
    kx, kw, kb, kbig = jax.random.split(key, 4)

    # Input matching the PyTorch module: x1 = torch.randn(1, 10)
    x1 = jax.random.normal(kx, (1, IN_FEATURES), dtype=jnp.float32)

    # Deterministic Linear(10, 10) parameters (PyTorch-style uniform init
    # range), stored as (in, out) == PyTorch weight (out, in) transposed.
    bound = 1.0 / (IN_FEATURES ** 0.5)
    w = jax.random.uniform(kw, (IN_FEATURES, OUT_FEATURES), jnp.float32,
                           minval=-bound, maxval=bound)
    b = jax.random.uniform(kb, (OUT_FEATURES,), jnp.float32,
                           minval=-bound, maxval=bound)

    # Primary case from the spec: (1, 10) -> (1, 10), no-grid VMEM path.
    out = jax.block_until_ready(linear_tanh(x1, w, b))
    ref = jnp.tanh(x1 @ w + b)
    assert out.shape == (1, OUT_FEATURES)
    assert jnp.allclose(out, ref, atol=1e-5, rtol=1e-5)

    # Also exercise the gridded (weight-resident, >=2 parallel steps) path,
    # including the non-multiple-of-TM row-padding branch.
    xb = jax.random.normal(kbig, (600, IN_FEATURES), dtype=jnp.float32)
    out_b = jax.block_until_ready(linear_tanh(xb, w, b))
    ref_b = jnp.tanh(xb @ w + b)
    assert out_b.shape == (600, OUT_FEATURES)
    assert jnp.allclose(out_b, ref_b, atol=1e-5, rtol=1e-5)

    print("KERNEL_OK")
</pallas_src>

<mosaic_0001>
module attributes {stable_mosaic.version = 11 : i64} {
  func.func @linear_tanh_kernel(%arg0: memref<1x10xf32, #tpu.memory_space<vmem>>, %arg1: memref<10x10xf32, #tpu.memory_space<vmem>>, %arg2: memref<1x10xf32, #tpu.memory_space<vmem>>, %arg3: memref<1x10xf32, #tpu.memory_space<vmem>>) attributes {dimension_semantics = [], scalar_prefetch = 0 : i64, scratch_operands = 0 : i64, tpu.core_type = #tpu.core_type<tc>} {
    %c0 = arith.constant 0 : index
    %c0_0 = arith.constant 0 : index
    %0 = vector.load %arg0[%c0, %c0_0] : memref<1x10xf32, #tpu.memory_space<vmem>>, vector<1x10xf32>
    %c0_1 = arith.constant 0 : index
    %c0_2 = arith.constant 0 : index
    %1 = vector.load %arg1[%c0_1, %c0_2] : memref<10x10xf32, #tpu.memory_space<vmem>>, vector<10x10xf32>
    %cst = arith.constant dense<0.000000e+00> : vector<1x10xf32>
    %2 = tpu.matmul %0, %1, %cst {dimension_numbers = #tpu.dot_dimension_numbers<[1], [0], [0], [1], [0, 0, 1, 1], [], []>} : vector<1x10xf32>, vector<10x10xf32>, vector<1x10xf32> -> vector<1x10xf32>
    %c0_3 = arith.constant 0 : index
    %c0_4 = arith.constant 0 : index
    %3 = vector.load %arg2[%c0_3, %c0_4] : memref<1x10xf32, #tpu.memory_space<vmem>>, vector<1x10xf32>
    %4 = arith.addf %2, %3 : vector<1x10xf32>
    %5 = math.tanh %4 : vector<1x10xf32>
    %c0_5 = arith.constant 0 : index
    %c0_6 = arith.constant 0 : index
    %6 = vector.load %arg3[%c0_5, %c0_6] : memref<1x10xf32, #tpu.memory_space<vmem>>, vector<1x10xf32>
    tpu.vector_store %arg3[%c0_5, %c0_6], %5 {strides = array<i32>} : memref<1x10xf32, #tpu.memory_space<vmem>>, vector<1x10xf32>,
    return
  }
}

</mosaic_0001>

<bundles_post_ra>
// kernel: tpu_custom_call.1
= control target key start
LH: loop header
LB: loop body
LE: loop exit
PB: predicated region body
PF: predicated region fallthrough
CT: control target
= control target key end

     0   :  { %8 = vsyncpa [#allocation3], 0  ;;  %s316_s0 = inlined_call_operand.hbm [shape: f32[1,10], index: 0, kind: input, shape index: {}]   ;;  %s317_s1 = inlined_call_operand.hbm [shape: f32[10,10], index: 1, kind: input, shape index: {}]   ;;  %s318_s2 = inlined_call_operand.vmem [shape: f32[1,10], index: 2, kind: input, shape index: {}]   ;;  %s319_s3 = inlined_call_operand.hbm [shape: f32[1,10], index: 3, kind: output, shape index: {}]  }
   0x1   :  { %9 = vsyncpa [#allocation6], 0 }
   0x2   :  { %10 = vsyncpa [#allocation4], 0  ;;  %s241_s12 = smov [#allocation2]   ;;  %s242_s14 = smov [#allocation5]  }
   0x3   :  { %s17_s13 = sshll.u32 %s241_s12, 4  ;;  %s26_s15 = sshll.u32 %s242_s14, 4  ;;  %s18_s13 = int_to_ptr.vmem [resolvable:$true] %s17_s13  ;;  %s270_s15 = int_to_ptr.vmem [resolvable:$true] %s26_s15 }
   0x4   :  { %s169_s18 = scalar_lea.hbm %s316_s0, 16 }
   0x5   :  { %p170_p0 = scmp.ne.s32.totalorder %s316_s0, %s169_s18  ;;  %p173_p1 = scmp.lt.u32.totalorder %s169_s18, %s316_s0 }
   0x7   :  { %p175_p2 = pnand %p173_p1, %p170_p0 }
   0x9   :  { %178 = shalt.err (!%p175_p2)
}
   0xa   :  { %s179_s23 = scalar_lea.vmem %s18_s13, 16  ;;  %s183_s24 = scalar_lea.vmem %s18_s13, 32 }
   0xb   :  { %p180_p3 = scmp.ne.s32.totalorder %s18_s13, %s179_s23  ;;  %p184_p4 = scmp.lt.s32.totalorder %s18_s13, %s18_s13 }
   0xc   :  { %p185_p5 = scmp.lt.s32.totalorder %s183_s24, %s179_s23 }
   0xe   :  { %p186_p6 = por %p185_p5, %p184_p4 }
  0x10   :  { %p187_p7 = pnand %p186_p6, %p180_p3 }
  0x12   :  { %190 = shalt.err (!%p187_p7)
}
  0x13   :  { %20 = dma.hbm_to_vmem [thread:$0]  %s316_s0, 16, %s18_s13, [#allocation3]  }
  0x14   :  { %s191_s29 = scalar_lea.hbm %s317_s1, 256 }
  0x15   :  { %p192_p8 = scmp.ne.s32.totalorder %s317_s1, %s191_s29  ;;  %p195_p9 = scmp.lt.u32.totalorder %s191_s29, %s317_s1 }
  0x17   :  { %p197_p10 = pnand %p195_p9, %p192_p8 }
  0x19   :  { %200 = shalt.err (!%p197_p10)
}
  0x1a   :  { %s201_s7 = scalar_lea.vmem %s270_s15, 256  ;;  %p206_p12 = scmp.lt.s32.totalorder %s270_s15, %s270_s15 }
  0x1b   :  { %p202_p11 = scmp.ne.s32.totalorder %s270_s15, %s201_s7  ;;  %p207_p13 = scmp.lt.s32.totalorder %s201_s7, %s201_s7 }
  0x1d   :  { %p208_p0 = por %p207_p13, %p206_p12 }
  0x1f   :  { %p209_p1 = pnand %p208_p0, %p202_p11 }
  0x21   :  { %212 = shalt.err (!%p209_p1)
}
  0x22   :  { %s243_s0 = smov 128   ;;  %s244_s8 = smov 8  }
  0x23   :  { %32 = dma.hbm_to_vmem [thread:$0]  %s317_s1, 256, %s270_s15, [#allocation6], %s243_s0, %s243_s0, %s244_s8  }
  0x24   :  { %235 = dma.done.wait [#allocation3], 16  }
  0x25   :  { %236 = vsyncadd [#allocation3], 4294967280 }
  0x26   :  { %237 = dma.done.wait [#allocation6], 256  }
  0x27   :  { %238 = vsyncadd [#allocation6], 4294967040  ;;  %v245_v0 = vmov 0.0|0.0   ;;  %vm246_vm0 = vmmov 0   ;;  %v247_v1 = vmov 0.0   ;;  %vm49_vm1 = vcmask 1041408  }
  0x28   :  { %154 = vmatprep.subr.bf16.mxu0 %v245_v0  ;;  %151 = vmatprep.mubr.msk.f32.mxu0 %vm246_vm0, %v247_v1  ;;  %v42_v2 = vld [vmem:[#allocation5] sm:$0xff]  ;;  %v43_v3 = vld [vmem:[#allocation5 + $0x8] sm:$0x3]  ;;  %vm248_vm2 = vmmov 1   ;;  %v41_v5 = vld [vmem:[#allocation2] sm:$0x1] }
  0x29   :  { %vm156_vm3 = vmpackc.low %vm49_vm1, %vm248_vm2  ;;  %v155_v4 = vpack.c.bf16 %v43_v3, %v42_v2  ;;  %vm45_vm4 = vcmask 80896   ;;  %v44_v6 = vld [vmem:[%s318_s2] sm:$0x1]  ;;  %s249_s12 = smov [#allocation7]   ;;  %vm124_vm5 = vcmask 73728  }
  0x2a   :  { %s132_s13 = sshll.u32 %s249_s12, 4  ;;  %s133_s13 = int_to_ptr.vmem [resolvable:$true] %s132_s13 }
  0x2b   :  { %157 = vmatpush3.bf16.msk.msra.mxu0 %vm156_vm3, %v155_v4  ;;  %s213_s14 = scalar_lea.vmem %s133_s13, 16  ;;  %s217_s15 = scalar_lea.vmem %s133_s13, 32 }
  0x2c   :  { %p214_p2 = scmp.ne.s32.totalorder %s133_s13, %s213_s14  ;;  %p218_p3 = scmp.lt.s32.totalorder %s133_s13, %s133_s13 }
  0x2d   :  { %p219_p4 = scmp.lt.s32.totalorder %s217_s15, %s213_s14 }
  0x2e   :  { %152 = vmatmul.mubr.msk.f32.vlgmr.msra.gmra.mrb[0].mxu0 %vm45_vm4, %v41_v5 }
  0x2f   :  { %p220_p5 = por %p219_p4, %p218_p3 }
  0x31   :  { %p221_p6 = pnand %p220_p5, %p214_p2 }
 0x101   :  { %v119_v7 = vpop.f32.mrb[0].mxu0 }
 0x102   :  { %v120_v8 = vadd.f32 %v119_v7, %v44_v6  ;;  %v153_v9 = vpop.f32.mrb[1].mxu0 }
 0x104   :  { %167 = vtanh.f32 %v120_v8 }
 0x10e   :  { %v168_v10 = vpop.eup %167 }
 0x10f   :  { %125 = vst.msk [vmem:[#allocation7] sm:$0x1] %vm124_vm5, %v168_v10 }
 0x110   :  { %224 = shalt.err (!%p221_p6)
}
 0x111   :  { %s225_s17 = scalar_lea.hbm %s319_s3, 16 }
 0x112   :  { %p226_p7 = scmp.ne.s32.totalorder %s319_s3, %s225_s17  ;;  %p229_p8 = scmp.lt.u32.totalorder %s225_s17, %s319_s3 }
 0x114   :  { %p231_p9 = pnand %p229_p8, %p226_p7 }
 0x116   :  { %234 = shalt.err (!%p231_p9)
}
 0x117   :  { %135 = dma.vmem_to_hbm [thread:$0]  %s133_s13, 16, %s319_s3, [#allocation4]  }
 0x118   :  { %239 = dma.done.wait [#allocation4], 16  }
 0x119   :  { %240 = vsyncadd [#allocation4], 4294967280 }
 0x11a   :  { %139 = vsyncpa [#allocation3], 1 }
 0x11b   :  { %140 = vsyncpa [#allocation6], 1 }
 0x11c   :  { %141 = vsyncpa [#allocation4], 1 }

</bundles_post_ra>
